<compile_context>
chip_gen: v5e
topology: v5e:2x2
jax: 0.10.0
libtpu: 0.0.40
codegen_flags: <defaults>
</compile_context>

<pallas_src>
import functools

import numpy as np
import jax
import jax.numpy as jnp
from jax.experimental import pallas as pl
from jax.experimental.pallas import tpu as pltpu

MIN_SCALE = 1e-5


def _softplus(x):
    # single-branch numerically-stable softplus: one EUP exp + one log1p, no select
    return jnp.maximum(x, 0.0) + jnp.log1p(jnp.exp(-jnp.abs(x)))


def _round_up(v, m):
    return ((v + m - 1) // m) * m


# ---------------------------------------------------------------------------
# Fused kernel: whole DLinear forward on one (tb, L0) batch tile.
# refs = (W0, b0, W1, b1, ..., P, Pb, out_ref) where Wi/bi are the decomposition-folded
# layer weights, P/Pb the expanded StudentT projection, out_ref the packed output
# (tb, 4*pred_len) = [df | loc | scale_t | mean_abs_scale broadcast].
# ---------------------------------------------------------------------------
def fused_dlinear_kernel(x_ref, *refs, n_fused, pred_len):
    out_ref = refs[-1]
    p_ref, pb_ref = refs[-3], refs[-2]

    x = x_ref[...]                                                   # (tb, L0)
    # mean_abs_scaling: mean(|x|, axis=1) clamped to MIN_SCALE; reciprocal is taken once
    # on the (tb, 1) column (exact) and broadcast-multiplied -- no full-tile divide.
    scale = jnp.maximum(jnp.mean(jnp.abs(x), axis=1, keepdims=True), MIN_SCALE)
    inv_scale = pl.reciprocal(scale, approx=False)
    y = x * inv_scale

    # folded (series_decomp + Linear_Seasonal + Linear_Trend) + ReLU, one matmul per layer
    for i in range(n_fused):
        w = refs[2 * i][...]
        b = refs[2 * i + 1][...]
        y = jnp.maximum(jnp.dot(y, w, preferred_element_type=jnp.float32) + b, 0.0)

    # StudentT args projection (pre-expanded so no reshape to (-1, pred_len, hidden)).
    raw = jnp.dot(y, p_ref[...], preferred_element_type=jnp.float32) + pb_ref[...]

    # One softplus pass over the whole (tb, 3*pred_len) tile, then a lane-mask select:
    #   lanes [0, p)  -> df      = 2 + softplus(raw)
    #   lanes [p, 2p) -> loc     = raw
    #   lanes [2p,3p) -> scale_t = softplus(raw)
    sp = _softplus(raw)
    lane = jax.lax.broadcasted_iota(jnp.int32, raw.shape, 1)
    packed = jnp.where(lane < pred_len, 2.0 + sp,
                       jnp.where(lane < 2 * pred_len, raw, sp))

    # Two direct stores (no slice-then-concatenate rebuild of the output layout).
    out_ref[:, : 3 * pred_len] = packed
    out_ref[:, 3 * pred_len:] = jnp.broadcast_to(scale, (scale.shape[0], pred_len))


# ---------------------------------------------------------------------------
# Host-side parameter folding
# ---------------------------------------------------------------------------
def moving_avg_matrix(length, kernel_size):
    """Static (L, L) matrix A with trend = x @ A (edge-replicated AvgPool1d, stride 1)."""
    # Edge padding (k-1)//2 on both sides only matches torch AvgPool1d for odd kernel_size.
    assert kernel_size % 2 == 1, "series_decomp folding assumes odd kernel_size"
    p = (kernel_size - 1) // 2
    a = np.zeros((length, length), np.float32)
    for t in range(length):
        for j in range(kernel_size):
            s = min(max(t + j - p, 0), length - 1)
            a[s, t] += 1.0 / kernel_size
    return jnp.asarray(a)


def fold_layer(ws, bs, wt, bt, kernel_size):
    """W_fused = (I - A) @ Ws + A @ Wt,  b_fused = bs + bt."""
    l_in = ws.shape[0]
    a = moving_avg_matrix(l_in, kernel_size)
    eye = jnp.eye(l_in, dtype=jnp.float32)
    return (eye - a) @ ws + a @ wt, bs + bt


def expand_proj(proj_w, proj_b, pred_len, hidden):
    """Expand the (hidden, 3) StudentT heads into (pred_len*hidden, 3*pred_len) so the
    flattened last activation maps straight to [df | loc | scale_t]."""
    pw = np.asarray(proj_w, np.float32)                  # (hidden, 3)
    pb = np.asarray(proj_b, np.float32).reshape(-1)      # (3,)
    p_mat = np.zeros((pred_len * hidden, 3 * pred_len), np.float32)
    bias = np.zeros((1, 3 * pred_len), np.float32)
    for step in range(pred_len):
        for h in range(hidden):
            for c in range(3):
                p_mat[step * hidden + h, c * pred_len + step] = pw[h, c]
    for c in range(3):
        bias[0, c * pred_len:(c + 1) * pred_len] = pb[c]
    return jnp.asarray(p_mat), jnp.asarray(bias)


# ---------------------------------------------------------------------------
# Wrapper: one fused pallas_call, batch-tiled "parallel" grid
# ---------------------------------------------------------------------------
def dlinear_forward(x, fused_layers, proj_mat, proj_bias, *, pred_len, batch_tile=4096):
    B, L0 = x.shape
    # Tile rows grow with B (multiple of 8), aim for >= 2 grid tiles so the "parallel"
    # axis can span both v7x TensorCores, capped at batch_tile so big batches pipeline.
    tb = min(batch_tile, max(8, _round_up(-(-B // 2), 8)))
    n_tiles = -(-B // tb)
    Bp = n_tiles * tb
    xp = jnp.pad(x, ((0, Bp - B), (0, 0))) if Bp != B else x

    in_specs = [pl.BlockSpec((tb, L0), lambda i: (i, 0))]
    weight_inputs = []
    for w, b in fused_layers:
        weight_inputs += [w, b]
        in_specs += [pl.BlockSpec(w.shape, lambda i: (0, 0)),
                     pl.BlockSpec(b.shape, lambda i: (0, 0))]
    weight_inputs += [proj_mat, proj_bias]
    in_specs += [pl.BlockSpec(proj_mat.shape, lambda i: (0, 0)),
                 pl.BlockSpec(proj_bias.shape, lambda i: (0, 0))]

    out_w = 4 * pred_len
    out = pl.pallas_call(
        functools.partial(fused_dlinear_kernel,
                          n_fused=len(fused_layers), pred_len=pred_len),
        out_shape=jax.ShapeDtypeStruct((Bp, out_w), jnp.float32),
        grid=(n_tiles,),
        in_specs=in_specs,
        out_specs=pl.BlockSpec((tb, out_w), lambda i: (i, 0)),
        compiler_params=pltpu.CompilerParams(
            dimension_semantics=("parallel",),
            vmem_limit_bytes=32 * 1024 * 1024),
    )(xp, *weight_inputs)

    df = out[:B, 0:pred_len]
    loc = out[:B, pred_len:2 * pred_len]
    sc = out[:B, 2 * pred_len:3 * pred_len]
    scale = out[:B, 3 * pred_len:3 * pred_len + 1]
    return (df, loc, sc), jnp.zeros_like(scale), scale


# ---------------------------------------------------------------------------
# Pure-JAX reference mirroring the PyTorch forward (uses the UNFUSED params, so it also
# validates the host-side folding math).
# ---------------------------------------------------------------------------
def ref_forward(x, layer_params, proj_w, proj_b, kernel_size, pred_len, hidden):
    scale = jnp.clip(jnp.mean(jnp.abs(x), axis=1, keepdims=True), MIN_SCALE, None)
    y = x / scale
    p = (kernel_size - 1) // 2
    for (ws, bs, wt, bt) in layer_params:
        L = y.shape[1]
        xpad = jnp.concatenate(
            [jnp.repeat(y[:, :1], p, axis=1), y, jnp.repeat(y[:, -1:], p, axis=1)], axis=1)
        trend = jnp.mean(jnp.stack([xpad[:, j:j + L] for j in range(kernel_size)], 0), 0)
        seasonal = y - trend
        y = jnp.maximum(seasonal @ ws + bs + trend @ wt + bt, 0.0)
    B = x.shape[0]
    raw = y.reshape(B * pred_len, hidden) @ proj_w + proj_b
    df = (2.0 + jax.nn.softplus(raw[:, 0])).reshape(B, pred_len)
    loc = raw[:, 1].reshape(B, pred_len)
    sc = jax.nn.softplus(raw[:, 2]).reshape(B, pred_len)
    return (df, loc, sc), jnp.zeros_like(scale), scale


if __name__ == "__main__":
    # Config consistent with the module's constructor.
    context_length = 32
    prediction_length = 8
    hidden = 4                                            # distribution_hidden_state
    kernel_size = 5
    nodes = [context_length, 64, prediction_length * hidden]   # nodes[-1] overridden as in __init__
    n_layers = len(nodes)
    B = 20                                                # exercises 2 grid tiles + row padding

    key = jax.random.PRNGKey(0)
    k_bias, k_proj_w, k_proj_b, k_x = jax.random.split(key, 4)

    # Linear_Seasonal / Linear_Trend: weight = 1/nodes[i] * ones(nodes[i+1], nodes[i]),
    # stored transposed as (in, out); biases synthetic-deterministic.
    layer_params = []
    bias_keys = jax.random.split(k_bias, (n_layers - 1) * 2)
    for i in range(n_layers - 1):
        n_in, n_out = nodes[i], nodes[i + 1]
        ws = jnp.full((n_in, n_out), 1.0 / n_in, dtype=jnp.float32)
        wt = jnp.full((n_in, n_out), 1.0 / n_in, dtype=jnp.float32)
        bound = 1.0 / float(np.sqrt(n_in))
        bs = jax.random.uniform(bias_keys[2 * i], (1, n_out), jnp.float32, -bound, bound)
        bt = jax.random.uniform(bias_keys[2 * i + 1], (1, n_out), jnp.float32, -bound, bound)
        layer_params.append((ws, bs, wt, bt))

    # StudentT args projection: three Linear(hidden -> 1) heads stacked into (hidden, 3).
    proj_bound = 1.0 / float(np.sqrt(hidden))
    proj_w = jax.random.uniform(k_proj_w, (hidden, 3), jnp.float32, -proj_bound, proj_bound)
    proj_b = jax.random.uniform(k_proj_b, (1, 3), jnp.float32, -proj_bound, proj_bound)

    # past_target input: (batch, context_length)
    x = jax.random.normal(k_x, (B, context_length), jnp.float32)

    # Host-side folding: decomposition -> single matmul per layer; projection expansion.
    fused_layers = [fold_layer(ws, bs, wt, bt, kernel_size)
                    for (ws, bs, wt, bt) in layer_params]
    proj_mat, proj_bias = expand_proj(proj_w, proj_b, prediction_length, hidden)

    fwd = jax.jit(functools.partial(dlinear_forward, pred_len=prediction_length))
    (df, loc, sc), zeros_scale, scale = jax.block_until_ready(
        fwd(x, fused_layers, proj_mat, proj_bias))

    (rdf, rloc, rsc), rzeros, rscale = ref_forward(
        x, layer_params, proj_w, proj_b, kernel_size, prediction_length, hidden)

    assert df.shape == (B, prediction_length)
    assert loc.shape == (B, prediction_length)
    assert sc.shape == (B, prediction_length)
    assert scale.shape == (B, 1) and zeros_scale.shape == (B, 1)
    assert jnp.allclose(df, rdf, atol=1e-4, rtol=1e-4)
    assert jnp.allclose(loc, rloc, atol=1e-4, rtol=1e-4)
    assert jnp.allclose(sc, rsc, atol=1e-4, rtol=1e-4)
    assert jnp.allclose(scale, rscale, atol=1e-6)
    assert jnp.all(zeros_scale == 0)

    print("KERNEL_OK")
</pallas_src>

<mosaic_0001>
module attributes {stable_mosaic.version = 11 : i64} {
  func.func @fused_dlinear_kernel(%arg0: i32, %arg1: memref<16x32xf32, #tpu.memory_space<vmem>>, %arg2: memref<32x64xf32, #tpu.memory_space<vmem>>, %arg3: memref<1x64xf32, #tpu.memory_space<vmem>>, %arg4: memref<64x32xf32, #tpu.memory_space<vmem>>, %arg5: memref<1x32xf32, #tpu.memory_space<vmem>>, %arg6: memref<32x24xf32, #tpu.memory_space<vmem>>, %arg7: memref<1x24xf32, #tpu.memory_space<vmem>>, %arg8: memref<16x32xf32, #tpu.memory_space<vmem>>) attributes {dimension_semantics = [#tpu.dimension_semantics<parallel>], iteration_bounds = array<i64: 2>, scalar_prefetch = 0 : i64, scratch_operands = 0 : i64, tpu.core_type = #tpu.core_type<tc>, window_params = [{transform_indices = @transform_0, window_bounds = array<i64: 16, 32>}, {pipeline_mode = #tpu.pipeline_mode<synchronous>, transform_indices = @transform_1, window_bounds = array<i64: 32, 64>}, {pipeline_mode = #tpu.pipeline_mode<synchronous>, transform_indices = @transform_2, window_bounds = array<i64: 1, 64>}, {pipeline_mode = #tpu.pipeline_mode<synchronous>, transform_indices = @transform_3, window_bounds = array<i64: 64, 32>}, {pipeline_mode = #tpu.pipeline_mode<synchronous>, transform_indices = @transform_4, window_bounds = array<i64: 1, 32>}, {pipeline_mode = #tpu.pipeline_mode<synchronous>, transform_indices = @transform_5, window_bounds = array<i64: 32, 24>}, {pipeline_mode = #tpu.pipeline_mode<synchronous>, transform_indices = @transform_6, window_bounds = array<i64: 1, 24>}, {transform_indices = @transform_7, window_bounds = array<i64: 16, 32>}]} {
    %c0 = arith.constant 0 : index
    %c0_0 = arith.constant 0 : index
    %0 = vector.load %arg1[%c0, %c0_0] : memref<16x32xf32, #tpu.memory_space<vmem>>, vector<16x32xf32>
    %1 = math.absf %0 : vector<16x32xf32>
    %cst = arith.constant dense<0.000000e+00> : vector<16xf32>
    %2 = vector.multi_reduction <add>, %1, %cst [1] : vector<16x32xf32> to vector<16xf32>
    %3 = vector.shape_cast %2 : vector<16xf32> to vector<16x1xf32>
    %cst_1 = arith.constant 3.200000e+01 : f32
    %4 = vector.broadcast %cst_1 : f32 to vector<16x1xf32>
    %5 = arith.divf %3, %4 : vector<16x1xf32>
    %cst_2 = arith.constant 9.99999974E-6 : f32
    %6 = vector.broadcast %cst_2 : f32 to vector<16x1xf32>
    %7 = arith.maximumf %5, %6 : vector<16x1xf32>
    %8 = tpu.reciprocal %7 : vector<16x1xf32> -> vector<16x1xf32>
    %9 = vector.broadcast %8 : vector<16x1xf32> to vector<16x32xf32>
    %10 = arith.mulf %0, %9 : vector<16x32xf32>
    %c0_3 = arith.constant 0 : index
    %c0_4 = arith.constant 0 : index
    %11 = vector.load %arg2[%c0_3, %c0_4] : memref<32x64xf32, #tpu.memory_space<vmem>>, vector<32x64xf32>
    %c0_5 = arith.constant 0 : index
    %c0_6 = arith.constant 0 : index
    %12 = vector.load %arg3[%c0_5, %c0_6] : memref<1x64xf32, #tpu.memory_space<vmem>>, vector<1x64xf32>
    %cst_7 = arith.constant dense<0.000000e+00> : vector<16x64xf32>
    %13 = tpu.matmul %10, %11, %cst_7 {dimension_numbers = #tpu.dot_dimension_numbers<[1], [0], [0], [1], [0, 0, 1, 1], [], []>} : vector<16x32xf32>, vector<32x64xf32>, vector<16x64xf32> -> vector<16x64xf32>
    %14 = vector.broadcast %12 : vector<1x64xf32> to vector<16x64xf32>
    %15 = arith.addf %13, %14 : vector<16x64xf32>
    %cst_8 = arith.constant 0.000000e+00 : f32
    %16 = vector.broadcast %cst_8 : f32 to vector<16x64xf32>
    %17 = arith.maximumf %15, %16 : vector<16x64xf32>
    %c0_9 = arith.constant 0 : index
    %c0_10 = arith.constant 0 : index
    %18 = vector.load %arg4[%c0_9, %c0_10] : memref<64x32xf32, #tpu.memory_space<vmem>>, vector<64x32xf32>
    %c0_11 = arith.constant 0 : index
    %c0_12 = arith.constant 0 : index
    %19 = vector.load %arg5[%c0_11, %c0_12] : memref<1x32xf32, #tpu.memory_space<vmem>>, vector<1x32xf32>
    %cst_13 = arith.constant dense<0.000000e+00> : vector<16x32xf32>
    %20 = tpu.matmul %17, %18, %cst_13 {dimension_numbers = #tpu.dot_dimension_numbers<[1], [0], [0], [1], [0, 0, 1, 1], [], []>} : vector<16x64xf32>, vector<64x32xf32>, vector<16x32xf32> -> vector<16x32xf32>
    %21 = vector.broadcast %19 : vector<1x32xf32> to vector<16x32xf32>
    %22 = arith.addf %20, %21 : vector<16x32xf32>
    %cst_14 = arith.constant 0.000000e+00 : f32
    %23 = vector.broadcast %cst_14 : f32 to vector<16x32xf32>
    %24 = arith.maximumf %22, %23 : vector<16x32xf32>
    %c0_15 = arith.constant 0 : index
    %c0_16 = arith.constant 0 : index
    %25 = vector.load %arg6[%c0_15, %c0_16] : memref<32x24xf32, #tpu.memory_space<vmem>>, vector<32x24xf32>
    %cst_17 = arith.constant dense<0.000000e+00> : vector<16x24xf32>
    %26 = tpu.matmul %24, %25, %cst_17 {dimension_numbers = #tpu.dot_dimension_numbers<[1], [0], [0], [1], [0, 0, 1, 1], [], []>} : vector<16x32xf32>, vector<32x24xf32>, vector<16x24xf32> -> vector<16x24xf32>
    %c0_18 = arith.constant 0 : index
    %c0_19 = arith.constant 0 : index
    %27 = vector.load %arg7[%c0_18, %c0_19] : memref<1x24xf32, #tpu.memory_space<vmem>>, vector<1x24xf32>
    %28 = vector.broadcast %27 : vector<1x24xf32> to vector<16x24xf32>
    %29 = arith.addf %26, %28 : vector<16x24xf32>
    %cst_20 = arith.constant 0.000000e+00 : f32
    %30 = vector.broadcast %cst_20 : f32 to vector<16x24xf32>
    %31 = arith.maximumf %29, %30 : vector<16x24xf32>
    %32 = math.absf %29 : vector<16x24xf32>
    %cst_21 = arith.constant 0.000000e+00 : f32
    %33 = vector.broadcast %cst_21 : f32 to vector<16x24xf32>
    %34 = arith.subf %33, %32 : vector<16x24xf32>
    %35 = math.exp %34 : vector<16x24xf32>
    %36 = math.log1p %35 : vector<16x24xf32>
    %37 = arith.addf %31, %36 : vector<16x24xf32>
    %38 = tpu.iota {dimensions = array<i32: 1>} : vector<16x24xi32>
    %c8_i32 = arith.constant 8 : i32
    %39 = vector.broadcast %c8_i32 : i32 to vector<16x24xi32>
    %40 = arith.cmpi slt, %38, %39 : vector<16x24xi32>
    %cst_22 = arith.constant 2.000000e+00 : f32
    %41 = vector.broadcast %cst_22 : f32 to vector<16x24xf32>
    %42 = arith.addf %41, %37 : vector<16x24xf32>
    %c16_i32 = arith.constant 16 : i32
    %43 = vector.broadcast %c16_i32 : i32 to vector<16x24xi32>
    %44 = arith.cmpi slt, %38, %43 : vector<16x24xi32>
    %45 = arith.select %44, %29, %37 : vector<16x24xi1>, vector<16x24xf32>
    %46 = arith.select %40, %42, %45 : vector<16x24xi1>, vector<16x24xf32>
    %c0_23 = arith.constant 0 : index
    %c0_24 = arith.constant 0 : index
    %47 = vector.load %arg8[%c0_23, %c0_24] : memref<16x32xf32, #tpu.memory_space<vmem>>, vector<16x24xf32>
    tpu.vector_store %arg8[%c0_23, %c0_24], %46 {strides = array<i32>} : memref<16x32xf32, #tpu.memory_space<vmem>>, vector<16x24xf32>,
    %48 = vector.shape_cast %7 : vector<16x1xf32> to vector<16x1xf32>
    %49 = vector.broadcast %48 : vector<16x1xf32> to vector<16x8xf32>
    %c0_25 = arith.constant 0 : index
    %c24 = arith.constant 24 : index
    %50 = vector.load %arg8[%c0_25, %c24] : memref<16x32xf32, #tpu.memory_space<vmem>>, vector<16x8xf32>
    tpu.vector_store %arg8[%c0_25, %c24], %49 {strides = array<i32>} : memref<16x32xf32, #tpu.memory_space<vmem>>, vector<16x8xf32>,
    return
  }
  func.func @transform_0(%arg0: i32) -> (i32, i32) {
    %c0_i32 = arith.constant 0 : i32
    %c0_i32_0 = arith.constant 0 : i32
    return %arg0, %c0_i32 : i32, i32
  }
  func.func @transform_1(%arg0: i32) -> (i32, i32) {
    %c0_i32 = arith.constant 0 : i32
    %c0_i32_0 = arith.constant 0 : i32
    %c0_i32_1 = arith.constant 0 : i32
    return %c0_i32, %c0_i32_0 : i32, i32
  }
  func.func @transform_2(%arg0: i32) -> (i32, i32) {
    %c0_i32 = arith.constant 0 : i32
    %c0_i32_0 = arith.constant 0 : i32
    %c0_i32_1 = arith.constant 0 : i32
    return %c0_i32, %c0_i32_0 : i32, i32
  }
  func.func @transform_3(%arg0: i32) -> (i32, i32) {
    %c0_i32 = arith.constant 0 : i32
    %c0_i32_0 = arith.constant 0 : i32
    %c0_i32_1 = arith.constant 0 : i32
    return %c0_i32, %c0_i32_0 : i32, i32
  }
  func.func @transform_4(%arg0: i32) -> (i32, i32) {
    %c0_i32 = arith.constant 0 : i32
    %c0_i32_0 = arith.constant 0 : i32
    %c0_i32_1 = arith.constant 0 : i32
    return %c0_i32, %c0_i32_0 : i32, i32
  }
  func.func @transform_5(%arg0: i32) -> (i32, i32) {
    %c0_i32 = arith.constant 0 : i32
    %c0_i32_0 = arith.constant 0 : i32
    %c0_i32_1 = arith.constant 0 : i32
    return %c0_i32, %c0_i32_0 : i32, i32
  }
  func.func @transform_6(%arg0: i32) -> (i32, i32) {
    %c0_i32 = arith.constant 0 : i32
    %c0_i32_0 = arith.constant 0 : i32
    %c0_i32_1 = arith.constant 0 : i32
    return %c0_i32, %c0_i32_0 : i32, i32
  }
  func.func @transform_7(%arg0: i32) -> (i32, i32) {
    %c0_i32 = arith.constant 0 : i32
    %c0_i32_0 = arith.constant 0 : i32
    return %arg0, %c0_i32 : i32, i32
  }
}

</mosaic_0001>

<bundles_post_ra>
// kernel: dlinear_forward.1
= control target key start
LH: loop header
LB: loop body
LE: loop exit
PB: predicated region body
PF: predicated region fallthrough
CT: control target
= control target key end

     0   :  { %s656_s24 = smov 0   ;;  %s773_s0 = inlined_call_operand.vmem [shape: f32[32,32], index: 0, kind: input, shape index: {}]   ;;  %s774_s1 = inlined_call_operand.vmem [shape: f32[32,64], index: 1, kind: input, shape index: {}]   ;;  %s775_s2 = inlined_call_operand.vmem [shape: f32[1,64], index: 2, kind: input, shape index: {}]   ;;  %s776_s3 = inlined_call_operand.vmem [shape: f32[64,32], index: 3, kind: input, shape index: {}]   ;;  %s777_s4 = inlined_call_operand.vmem [shape: f32[1,32], index: 4, kind: input, shape index: {}]   ;;  %s778_s5 = inlined_call_operand.vmem [shape: f32[32,24], index: 5, kind: input, shape index: {}]   ;;  %s779_s6 = inlined_call_operand.vmem [shape: f32[1,24], index: 6, kind: input, shape index: {}]   ;;  %s780_s7 = inlined_call_operand.vmem [shape: f32[32,32], index: 7, kind: output, shape index: {}]  }
   0x1 LB: > { %s556_s25 = sadd.s32 4294967295, %s613_s24   ;;  %p560_p0 = scmp.ge.s32.totalorder %s613_s24, 1  ;;  %s613_s24 = sphi %s656_s24, %s17_s24  }
   0x2   : > { %p238_p1 = scmp.lt.s32.totalorder %s613_s24, 3 }
   0x4   : > { %p239_p2 = pnand %p560_p0, %p238_p1 }
   0x5   : > { %s561_s26 = sshll.u32 (!%p239_p2), %s556_s25, 1 }
   0x6   : > { %242 = sbr.rel (%p239_p2) target bundleno = 597 (0x255), region = 48  ;;  %p271_p3 = scmp.lt.s32.totalorder (!%p239_p2), %s561_s26, 3 }
   0xb   : > { %s782_s26 = smov (!%p271_p3, %s561_s26), 3  ;;  %vm286_vm0 = vcmask 261120   ;;  %v615_v6 = vmov 32.0   ;;  %v337_v8 = vld [vmem:[%s774_s1 + $0x18] sm:$0xff]  ;;  %v336_v9 = vld [vmem:[%s774_s1 + $0x10] sm:$0xff]  ;;  %v335_v11 = vld [vmem:[%s774_s1 + $0x8] sm:$0xff] }
   0xc   : > { %s562_s27 = sshll.u32 %s782_s26, 3  ;;  %593 = vrcp.f32 %v615_v6  ;;  %360 = vmatpush.msra.mxu0 %v337_v8  ;;  %v334_v12 = vld [vmem:[%s774_s1] sm:$0xff]  ;;  %v380_v18 = vld [vmem:[%s776_s3 + $0x38] sm:$0xff]  ;;  %v379_v19 = vld [vmem:[%s776_s3 + $0x30] sm:$0xff]  ;;  %vm385_vm10 = vcmask 523264   ;;  %vm494_vm14 = vcmask 195584  }
   0xd   : > { %s274_s30 = scalar_lea.vmem %s773_s0, %s562_s27  ;;  %400 = vmatpush.msra.mxu1 %v380_v18  ;;  %573 = vmatpush.msra.mxu3 %v380_v18  ;;  %v378_v21 = vld [vmem:[%s776_s3 + $0x28] sm:$0xff]  ;;  %v377_v23 = vld [vmem:[%s776_s3 + $0x20] sm:$0xff]  ;;  %v376_v24 = vld [vmem:[%s776_s3 + $0x18] sm:$0xff]  ;;  %s280_s8 = scalar_lea.vmem %s780_s7, %s562_s27 }
   0xe   : > { %v672_v0 = vld [vmem:[%s274_s30] sm:$0xff]  ;;  %v675_v2 = vld [vmem:[%s274_s30 + $0x8] sm:$0xff]  ;;  %361 = vmatpush.msra.mxu0 %v336_v9  ;;  %v375_v50 = vld [vmem:[%s776_s3 + $0x10] sm:$0xff] }
   0xf   : > { %v284_v1 = vand.u32 2147483647, %v672_v0  ;;  %v285_v4 = vand.u32 2147483647, %v675_v2  ;;  %401 = vmatpush.msra.mxu1 %v379_v19  ;;  %574 = vmatpush.msra.mxu3 %v379_v19  ;;  %v374_v51 = vld [vmem:[%s776_s3 + $0x8] sm:$0xff]  ;;  %v373_v52 = vld [vmem:[%s776_s3] sm:$0xff]  ;;  %v484_v19 = vlaneseq }
  0x10   : > { %362 = vmatpush.msra.mxu0 %v335_v11  ;;  %v420_v53 = vld [vmem:[%s778_s5 + $0x18] sm:$0xff]  ;;  %v590_v54 = vld [vmem:[%s775_s2] ss:$0 sm:$0xff]  ;;  %v419_v61 = vld [vmem:[%s778_s5 + $0x10] sm:$0xff] }
  0x11   : > { %v287_v3 = vsel %vm286_vm0, %v284_v1, 0.0  ;;  %v290_v5 = vsel %vm286_vm0, %v285_v4, 0.0  ;;  %402 = vmatpush.msra.mxu1 %v378_v21  ;;  %575 = vmatpush.msra.mxu3 %v378_v21  ;;  %v418_v62 = vld [vmem:[%s778_s5 + $0x8] sm:$0xff]  ;;  %v417_v63 = vld [vmem:[%s778_s5] sm:$0xff] }
  0x12   : > { %288 = vadd.xlane.f32.xlu0 %v287_v3  ;;  %v594_v7 = vpop.eup %593  ;;  %363 = vmatpush.msra.mxu0 %v334_v12 }
  0x13   : > { %v294_v10 = vmul.f32 32.0, %v594_v7  ;;  %vm298_vm1 = vweird.f32 %v594_v7  ;;  %403 = vmatpush.msra.mxu1 %v377_v23  ;;  %576 = vmatpush.msra.mxu3 %v377_v23 }
  0x14   : > { %443 = vmatpush.msra.mxu2 %v420_v53 }
  0x15   : > { %v295_v13 = vsub.f32 1.0, %v294_v10  ;;  %404 = vmatpush.msra.mxu1 %v376_v24  ;;  %577 = vmatpush.msra.mxu3 %v376_v24 }
  0x16   : > { %444 = vmatpush.msra.mxu2 %v419_v61 }
  0x17   : > { %v296_v14 = vmul.f32 %v594_v7, %v295_v13  ;;  %405 = vmatpush.msra.mxu1 %v375_v50  ;;  %578 = vmatpush.msra.mxu3 %v375_v50 }
  0x18   : > { %445 = vmatpush.msra.mxu2 %v418_v62 }
  0x19   : > { %v297_v15 = vadd.f32 %v594_v7, %v296_v14  ;;  %406 = vmatpush.msra.mxu1 %v374_v51  ;;  %579 = vmatpush.msra.mxu3 %v374_v51 }
  0x1a   : > { %291 = vadd.xlane.f32.xlu0 %v290_v5  ;;  %446 = vmatpush.msra.mxu2 %v417_v63 }
  0x1b   : > { %v299_v16 = vsel %vm298_vm1, %v594_v7, %v297_v15  ;;  %407 = vmatpush.msra.mxu1 %v373_v52  ;;  %580 = vmatpush.msra.mxu3 %v373_v52  ;;  %v592_v7 = vld [vmem:[%s779_s6] ss:$0 sm:$0xff] }
  0x85   : > { %v289_v17 = vpop.xlane.xlu0 %288 }
  0x86   : > { %v300_v20 = vmul.f32 %v299_v16, %v289_v17 }
  0x88   : > { %v701_v22 = vmax.f32 %v300_v20, 1e-05 }
  0x8a   : > { %595 = vrcp.f32 %v701_v22  ;;  %v315_v31 = vand.u32 2147483648, %v701_v22  ;;  %v313_v33 = vand.u32 2147483647, %v701_v22  ;;  %vm309_vm3 = vweird.f32 %v701_v22 }
  0x8c   : > { %v316_v36 = vor.u32 1.1754944e-38, %v315_v31  ;;  %vm314_vm5 = vcmp.eq.f32.partialorder %v313_v33, 8.507059e+37 }
  0x8d   : > { %v292_v25 = vpop.xlane.xlu0 %291 }
  0x8e   : > { %v301_v26 = vmul.f32 %v299_v16, %v292_v25  ;;  %v485_v25 = vand.u32 127, %v484_v19 }
  0x90   : > { %v596_v27 = vpop.eup %595  ;;  %v710_v28 = vmax.f32 %v301_v26, 1e-05  ;;  %vm489_vm12 = vcmp.lt.s32.totalorder %v485_v25, 16  ;;  %vm486_vm13 = vcmp.lt.s32.totalorder %v485_v25, 8 }
  0x91   : > { %v305_v29 = vmul.f32 %v596_v27, %v701_v22  ;;  %vm310_vm2 = vweird.f32 %v596_v27 }
  0x92   : > { %597 = vrcp.f32 %v710_v28  ;;  %vm311_vm4 = vmor %vm309_vm3, %vm310_vm2  ;;  %v329_v42 = vand.u32 2147483648, %v710_v28  ;;  %v327_v44 = vand.u32 2147483647, %v710_v28  ;;  %vm323_vm7 = vweird.f32 %v710_v28 }
  0x93   : > { %v306_v30 = vsub.f32 1.0, %v305_v29 }
  0x94   : > { %v330_v46 = vor.u32 1.1754944e-38, %v329_v42  ;;  %vm328_vm9 = vcmp.eq.f32.partialorder %v327_v44, 8.507059e+37 }
  0x95   : > { %v307_v32 = vmul.f32 %v596_v27, %v306_v30 }
  0x97   : > { %v308_v34 = vadd.f32 %v596_v27, %v307_v32 }
  0x98   : > { %v598_v35 = vpop.eup %597 }
  0x99   : > { %v312_v37 = vsel %vm311_vm4, %v596_v27, %v308_v34  ;;  %v319_v38 = vmul.f32 %v598_v35, %v710_v28  ;;  %vm324_vm6 = vweird.f32 %v598_v35 }
  0x9a   : > { %v317_v39 = vsel %vm314_vm5, %v316_v36, %v312_v37  ;;  %vm325_vm8 = vmor %vm323_vm7, %vm324_vm6 }
  0x9b   : > { %v332_v40 = vmul.f32 %v317_v39, %v672_v0  ;;  %v320_v41 = vsub.f32 1.0, %v319_v38  ;;  %v591_v0 = vld [vmem:[%s777_s4] ss:$0 sm:$0xff] }
  0x9d   : > { %565 = vmatmul.msk.f32.vlgmr.msra.gmra.mxu0 %vm286_vm0, %v332_v40  ;;  %v321_v43 = vmul.f32 %v598_v35, %v320_v41 }
  0x9f   : > { %v322_v45 = vadd.f32 %v598_v35, %v321_v43 }
  0xa1   : > { %v326_v47 = vsel %vm325_vm8, %v598_v35, %v322_v45 }
  0xa2   : > { %v331_v48 = vsel %vm328_vm9, %v330_v46, %v326_v47 }
  0xa3   : > { %v333_v49 = vmul.f32 %v331_v48, %v675_v2 }
  0xa5   : > { %566 = vmatmul.msk.f32.gmra.mxu0 %vm286_vm0, %v333_v49 }
 0x11a   : > { %v365_v55 = vpop.f32.mrf.mxu0 }
 0x11b   : > { %v366_v56 = vadd.f32 %v590_v54, %v365_v55 }
 0x11d   : > { %v371_v57 = vmax.f32 %v366_v56, 0.0 }
 0x11f   : > { %567 = vmatmul.msk.f32.vlgmr.msra.gmra.mxu1 %vm385_vm10, %v371_v57 }
 0x122   : > { %v368_v58 = vpop.f32.mrf.mxu0 }
 0x123   : > { %v369_v59 = vadd.f32 %v590_v54, %v368_v58 }
 0x125   : > { %v372_v60 = vmax.f32 %v369_v59, 0.0 }
 0x127   : > { %568 = vmatmul.msk.f32.vlgmr.msra.gmra.mxu3 %vm385_vm10, %v372_v60 }
 0x19c   : > { %v409_v1 = vpop.f32.mrf.mxu1 }
 0x19d   : > { %v410_v2 = vadd.f32 %v591_v0, %v409_v1 }
 0x19f   : > { %v415_v3 = vmax.f32 %v410_v2, 0.0 }
 0x1a1   : > { %569 = vmatmul.msk.f32.vlgmr.msra.gmra.mxu2 %vm286_vm0, %v415_v3 }
 0x1aa   : > { %v412_v4 = vpop.f32.mrf.mxu3 }
 0x1ab   : > { %v413_v5 = vadd.f32 %v591_v0, %v412_v4 }
 0x1ad   : > { %v416_v6 = vmax.f32 %v413_v5, 0.0 }
 0x1af   : > { %570 = vmatmul.msk.f32.gmra.mxu2 %vm286_vm0, %v416_v6  ;;  %vm497_vm0 = vcmask 261312  }
 0x224   : > { %v448_v8 = vpop.f32.mrf.mxu2 }
 0x225   : > { %v449_v9 = vadd.f32 %v592_v7, %v448_v8 }
 0x227   : > { %v456_v10 = vand.u32 2147483647, %v449_v9  ;;  %v454_v30 = vmax.f32 %v449_v9, 0.0 }
 0x229   : > { %v458_v11 = vsub.f32 0.0, %v456_v10 }
 0x22b   : > { %v460_v12 = vmul.f32 1.442695, %v458_v11 }
 0x22d   : > { %599 = vpow2.f32 %v460_v12 }
 0x232   : > { %v451_v13 = vpop.f32.mrf.mxu2 }
 0x233   : > { %v600_v14 = vpop.eup %599  ;;  %v452_v15 = vadd.f32 %v592_v7, %v451_v13 }
 0x234   : > { %v464_v16 = vadd.f32 1.0, %v600_v14  ;;  %v467_v17 = vmul.f32 -0.5, %v600_v14  ;;  %v470_v24 = vand.u32 2147483647, %v600_v14 }
 0x235   : > { %v457_v18 = vand.u32 2147483647, %v452_v15  ;;  %v455_v44 = vmax.f32 %v452_v15, 0.0 }
 0x236   : > { %601 = vlog2.f32 %v464_v16  ;;  %v468_v21 = vadd.f32 1.0, %v467_v17  ;;  %vm471_vm11 = vcmp.lt.f32.partialorder %v470_v24, 0.0004427343 }
 0x237   : > { %v459_v20 = vsub.f32 0.0, %v457_v18 }
 0x238   : > { %v469_v29 = vmul.f32 %v600_v14, %v468_v21 }
 0x239   : > { %v462_v23 = vmul.f32 1.442695, %v459_v20 }
 0x23b   : > { %603 = vpow2.f32 %v462_v23 }
 0x23c   : > { %v602_v26 = vpop.eup %601 }
 0x23d   : > { %v466_v27 = vmul.f32 0.6931472, %v602_v26 }
 0x23f   : > { %v472_v31 = vsel %vm471_vm11, %v469_v29, %v466_v27 }
 0x240   : > { %v482_v32 = vadd.f32 %v472_v31, %v454_v30 }
 0x241   : > { %v604_v33 = vpop.eup %603 }
 0x242   : > { %v487_v34 = vadd.f32 2.0, %v482_v32  ;;  %v490_v35 = vsel %vm489_vm12, %v449_v9, %v482_v32  ;;  %v473_v36 = vadd.f32 1.0, %v604_v33  ;;  %v476_v37 = vmul.f32 -0.5, %v604_v33 }
 0x243   : > { %v479_v40 = vand.u32 2147483647, %v604_v33 }
 0x244   : > { %v492_v38 = vsel %vm486_vm13, %v487_v34, %v490_v35  ;;  %605 = vlog2.f32 %v473_v36  ;;  %v477_v39 = vadd.f32 1.0, %v476_v37 }
 0x245   : > { %495 = vst.msk [vmem:[%s280_s8] sm:$0xff] %vm494_vm14, %v492_v38  ;;  %vm480_vm15 = vcmp.lt.f32.partialorder %v479_v40, 0.0004427343 }
 0x246   : > { %v478_v43 = vmul.f32 %v604_v33, %v477_v39  ;;  %498 = vst.msk [vmem:[%s280_s8] sm:$0xff] %vm497_vm0, %v701_v22 }
 0x24a   : > { %v606_v41 = vpop.eup %605 }
 0x24b   : > { %v475_v42 = vmul.f32 0.6931472, %v606_v41 }
 0x24d   : > { %v481_v45 = vsel %vm480_vm15, %v478_v43, %v475_v42 }
 0x24e   : > { %v483_v46 = vadd.f32 %v481_v45, %v455_v44 }
 0x250   : > { %v488_v47 = vadd.f32 2.0, %v483_v46  ;;  %v491_v48 = vsel %vm489_vm12, %v452_v15, %v483_v46 }
 0x252   : > { %v493_v49 = vsel %vm486_vm13, %v488_v47, %v491_v48 }
 0x253   : > { %496 = vst.msk [vmem:[%s280_s8 + $0x8] sm:$0xff] %vm494_vm14, %v493_v49 }
 0x254   : > { %499 = vst.msk [vmem:[%s280_s8 + $0x8] sm:$0xff] %vm497_vm0, %v710_v28 }
 0x255 PF: > { %s17_s24 = sadd.s32 1, %s613_s24  }
 0x256   : > { %p14_p4 = scmp.ge.s32.totalorder %s17_s24, 4  }
 0x258   :  { %16 = sbr.rel (!%p14_p4) target bundleno = 1 (0x1), region = 78 }

</bundles_post_ra>
